<compile_context>
chip_gen: v7x
topology: tpu7x:2x2x1
jax: 0.10.0
libtpu: 0.0.40
codegen_flags: <defaults>
</compile_context>

<pallas_src>
import jax
import jax.numpy as jnp
from jax.experimental import pallas as pl
from jax.experimental.pallas import tpu as pltpu

N_PARAMS = 40  # 37 used, padded to a round size for the SMEM table


def mlp_kernel(x_ref, p_ref, o_ref):
    """x_ref: (6, TB) f32 VMEM (feature-major, batch on lanes)
       p_ref: (N_PARAMS,) f32 SMEM scalar table
       o_ref: (6, TB) f32 VMEM
    """
    x = x_ref[...]                                         # (6, TB)

    # Layers 2+3 fused into one 6->1 affine: 6 scalar-operand FMAs on the VPU.
    v2 = x[0:1, :] * p_ref[0]
    v2 = v2 + x[1:2, :] * p_ref[1]
    v2 = v2 + x[2:3, :] * p_ref[2]
    v2 = v2 + x[3:4, :] * p_ref[3]
    v2 = v2 + x[4:5, :] * p_ref[4]
    v2 = v2 + x[5:6, :] * p_ref[5]
    v2 = v2 + p_ref[6]

    # Layer4: ReLU
    v3 = jnp.maximum(v2, 0.0)                              # (1, TB)

    # Layer5 (1->3 broadcast FMA) + Layer6 sigmoid (EUP), one row per hidden feature.
    s0 = jax.nn.sigmoid(v3 * p_ref[7] + p_ref[10])
    s1 = jax.nn.sigmoid(v3 * p_ref[8] + p_ref[11])
    s2 = jax.nn.sigmoid(v3 * p_ref[9] + p_ref[12])

    # Layer7 (3->6): six rows of scalar FMAs, assembled into one dense (6, TB) store.
    rows = []
    for o in range(6):
        base = 13 + 3 * o
        rows.append(s0 * p_ref[base] + s1 * p_ref[base + 1]
                    + s2 * p_ref[base + 2] + p_ref[31 + o])
    o_ref[...] = jnp.concatenate(rows, axis=0).astype(o_ref.dtype)


def _round_up(n, m):
    return ((n + m - 1) // m) * m


def mlp_forward_feature_major(xT, p_flat, *, tile_b=32768):
    """xT: (6, B) float32 feature-major activations (batch on the lane axis).
    Returns (6, B) float32."""
    F, B = xT.shape
    assert F == 6, "model expects 6 input features"
    # Lane tile: multiple of 256, capped so the grid keeps >= 2 "parallel" steps when the
    # batch allows (v7x shards parallel grid steps across its 2 TensorCores).
    tb = min(_round_up(tile_b, 256),
             max(256, _round_up(_round_up(B, 256) // 2, 256)))
    Bp = _round_up(B, tb)
    if Bp != B:
        # Zero tail: flows harmlessly through ReLU/sigmoid; padded columns are dropped below.
        xT = jnp.pad(xT, ((0, 0), (0, Bp - B)))
    grid = (Bp // tb,)

    outT = pl.pallas_call(
        mlp_kernel,
        out_shape=jax.ShapeDtypeStruct((6, Bp), jnp.float32),
        grid=grid,
        in_specs=[
            pl.BlockSpec((6, tb), lambda i: (0, i)),            # lane-dense activation tiles
            pl.BlockSpec(memory_space=pltpu.MemorySpace.SMEM),  # scalar parameter table
        ],
        out_specs=pl.BlockSpec((6, tb), lambda i: (0, i)),      # one dense store per tile
        compiler_params=pltpu.CompilerParams(
            dimension_semantics=("parallel",)),
        cost_estimate=pl.CostEstimate(
            flops=20 * B, transcendentals=3 * B, bytes_accessed=48 * B),
    )(xT, p_flat)
    return outT[:, :B]


def mlp_forward(x, p_flat, *, tile_b=32768):
    """x: (B, 6) float32 (torch-style batch-major). Transposed at the boundary so the
    kernel streams a lane-dense (6, B) layout; returns (B, 6) float32."""
    B, F = x.shape
    assert F == 6, "model expects 6 input features"
    return mlp_forward_feature_major(x.T, p_flat, tile_b=tile_b).T


def init_params(key):
    """Deterministic init mimicking torch.nn.Linear (uniform(-1/sqrt(fan_in), +))."""
    def linear(key, fan_in, fan_out):
        kw, kb = jax.random.split(key)
        bound = 1.0 / jnp.sqrt(jnp.float32(fan_in))
        # torch stores W as (out, in); we keep the transposed (in, out) copy.
        w_t = jax.random.uniform(kw, (fan_in, fan_out), jnp.float32, -bound, bound)
        b = jax.random.uniform(kb, (1, fan_out), jnp.float32, -bound, bound)
        return w_t, b

    k2, k3, k5, k7 = jax.random.split(key, 4)
    w2_t, b2 = linear(k2, 6, 4)
    w3_t, b3 = linear(k3, 4, 1)
    w5_t, b5 = linear(k5, 1, 3)
    w7_t, b7 = linear(k7, 3, 6)
    return dict(w2_t=w2_t, b2=b2, w3_t=w3_t, b3=b3,
                w5_t=w5_t, b5=b5, w7_t=w7_t, b7=b7)


def pack_params(p):
    """Fold layers 2+3 (both affine) into one exact 6->1 affine and flatten all
    weights/biases into one small f32 scalar table (lives in SMEM inside the kernel)."""
    w23 = (p["w2_t"] @ p["w3_t"])[:, 0]                    # (6,)   fused weight
    b23 = (p["b2"] @ p["w3_t"] + p["b3"])[0, 0]            # scalar fused bias
    w7 = p["w7_t"].T                                       # (6, 3) row-major by output
    flat = jnp.zeros((N_PARAMS,), jnp.float32)
    flat = flat.at[0:6].set(w23)
    flat = flat.at[6].set(b23)
    flat = flat.at[7:10].set(p["w5_t"][0, :])              # layer5 weight (1->3)
    flat = flat.at[10:13].set(p["b5"][0, :])               # layer5 bias
    flat = flat.at[13:31].set(w7.reshape(-1))              # layer7 weight (6 rows x 3)
    flat = flat.at[31:37].set(p["b7"][0, :])               # layer7 bias
    return flat


def mlp_reference(x, p):
    v1 = x @ p["w2_t"] + p["b2"]
    v2 = v1 @ p["w3_t"] + p["b3"]
    v3 = jnp.maximum(v2, 0.0)
    v4 = v3 @ p["w5_t"] + p["b5"]
    v5 = jax.nn.sigmoid(v4)
    v6 = v5 @ p["w7_t"] + p["b7"]
    return v6


if __name__ == "__main__":
    key = jax.random.PRNGKey(0)
    kx, kp, kx2 = jax.random.split(key, 3)
    params = init_params(kp)
    packed = pack_params(params)

    # Module-sized input (matches torch example: x1 = torch.randn(2, 6)).
    x1 = jax.random.normal(kx, (2, 6), jnp.float32)
    out = mlp_forward(x1, packed)
    jax.block_until_ready(out)
    ref = mlp_reference(x1, params)
    assert out.shape == (2, 6)
    assert jnp.allclose(out, ref, atol=1e-5, rtol=1e-5)

    # Larger batch to exercise the tiled, two-step "parallel" grid path (both TCs on v7x).
    xb = jax.random.normal(kx2, (4096, 6), jnp.float32)
    out_b = mlp_forward(xb, packed)
    jax.block_until_ready(out_b)
    ref_b = mlp_reference(xb, params)
    assert out_b.shape == (4096, 6)
    assert jnp.allclose(out_b, ref_b, atol=1e-5, rtol=1e-5)

    print("KERNEL_OK")
</pallas_src>

<mosaic_0001>
module attributes {stable_mosaic.version = 11 : i64} {
  func.func @mlp_kernel(%arg0: i32, %arg1: memref<6x256xf32, #tpu.memory_space<vmem>>, %arg2: memref<40xf32, #tpu.memory_space<smem>>, %arg3: memref<6x256xf32, #tpu.memory_space<vmem>>) attributes {dimension_semantics = [#tpu.dimension_semantics<parallel>], iteration_bounds = array<i64: 1>, scalar_prefetch = 0 : i64, scratch_operands = 0 : i64, tpu.core_type = #tpu.core_type<tc>, window_params = [{transform_indices = @transform_0, window_bounds = array<i64: 6, 256>}, {transform_indices = @transform_1, window_bounds = array<i64: 40>}, {transform_indices = @transform_2, window_bounds = array<i64: 6, 256>}]} {
    %c0 = arith.constant 0 : index
    %c0_0 = arith.constant 0 : index
    %0 = vector.load %arg1[%c0, %c0_0] : memref<6x256xf32, #tpu.memory_space<vmem>>, vector<6x256xf32>
    %1 = vector.extract_strided_slice %0 {offsets = [0, 0], sizes = [1, 256], strides = [1, 1]} : vector<6x256xf32> to vector<1x256xf32>
    %c0_1 = arith.constant 0 : index
    %2 = memref.load %arg2[%c0_1] : memref<40xf32, #tpu.memory_space<smem>>
    %3 = vector.broadcast %2 : f32 to vector<1x256xf32>
    %4 = arith.mulf %1, %3 : vector<1x256xf32>
    %5 = vector.extract_strided_slice %0 {offsets = [1, 0], sizes = [1, 256], strides = [1, 1]} : vector<6x256xf32> to vector<1x256xf32>
    %c1 = arith.constant 1 : index
    %6 = memref.load %arg2[%c1] : memref<40xf32, #tpu.memory_space<smem>>
    %7 = vector.broadcast %6 : f32 to vector<1x256xf32>
    %8 = arith.mulf %5, %7 : vector<1x256xf32>
    %9 = arith.addf %4, %8 : vector<1x256xf32>
    %10 = vector.extract_strided_slice %0 {offsets = [2, 0], sizes = [1, 256], strides = [1, 1]} : vector<6x256xf32> to vector<1x256xf32>
    %c2 = arith.constant 2 : index
    %11 = memref.load %arg2[%c2] : memref<40xf32, #tpu.memory_space<smem>>
    %12 = vector.broadcast %11 : f32 to vector<1x256xf32>
    %13 = arith.mulf %10, %12 : vector<1x256xf32>
    %14 = arith.addf %9, %13 : vector<1x256xf32>
    %15 = vector.extract_strided_slice %0 {offsets = [3, 0], sizes = [1, 256], strides = [1, 1]} : vector<6x256xf32> to vector<1x256xf32>
    %c3 = arith.constant 3 : index
    %16 = memref.load %arg2[%c3] : memref<40xf32, #tpu.memory_space<smem>>
    %17 = vector.broadcast %16 : f32 to vector<1x256xf32>
    %18 = arith.mulf %15, %17 : vector<1x256xf32>
    %19 = arith.addf %14, %18 : vector<1x256xf32>
    %20 = vector.extract_strided_slice %0 {offsets = [4, 0], sizes = [1, 256], strides = [1, 1]} : vector<6x256xf32> to vector<1x256xf32>
    %c4 = arith.constant 4 : index
    %21 = memref.load %arg2[%c4] : memref<40xf32, #tpu.memory_space<smem>>
    %22 = vector.broadcast %21 : f32 to vector<1x256xf32>
    %23 = arith.mulf %20, %22 : vector<1x256xf32>
    %24 = arith.addf %19, %23 : vector<1x256xf32>
    %25 = vector.extract_strided_slice %0 {offsets = [5, 0], sizes = [1, 256], strides = [1, 1]} : vector<6x256xf32> to vector<1x256xf32>
    %c5 = arith.constant 5 : index
    %26 = memref.load %arg2[%c5] : memref<40xf32, #tpu.memory_space<smem>>
    %27 = vector.broadcast %26 : f32 to vector<1x256xf32>
    %28 = arith.mulf %25, %27 : vector<1x256xf32>
    %29 = arith.addf %24, %28 : vector<1x256xf32>
    %c6 = arith.constant 6 : index
    %30 = memref.load %arg2[%c6] : memref<40xf32, #tpu.memory_space<smem>>
    %31 = vector.broadcast %30 : f32 to vector<1x256xf32>
    %32 = arith.addf %29, %31 : vector<1x256xf32>
    %cst = arith.constant 0.000000e+00 : f32
    %33 = vector.broadcast %cst : f32 to vector<1x256xf32>
    %34 = arith.maximumf %32, %33 : vector<1x256xf32>
    %c7 = arith.constant 7 : index
    %35 = memref.load %arg2[%c7] : memref<40xf32, #tpu.memory_space<smem>>
    %36 = vector.broadcast %35 : f32 to vector<1x256xf32>
    %37 = arith.mulf %34, %36 : vector<1x256xf32>
    %c10 = arith.constant 10 : index
    %38 = memref.load %arg2[%c10] : memref<40xf32, #tpu.memory_space<smem>>
    %39 = vector.broadcast %38 : f32 to vector<1x256xf32>
    %40 = arith.addf %37, %39 : vector<1x256xf32>
    %41 = arith.negf %40 : vector<1x256xf32>
    %42 = math.exp %41 : vector<1x256xf32>
    %cst_2 = arith.constant 1.000000e+00 : f32
    %43 = vector.broadcast %cst_2 : f32 to vector<1x256xf32>
    %44 = arith.addf %43, %42 : vector<1x256xf32>
    %45 = arith.divf %43, %44 : vector<1x256xf32>
    %c8 = arith.constant 8 : index
    %46 = memref.load %arg2[%c8] : memref<40xf32, #tpu.memory_space<smem>>
    %47 = vector.broadcast %46 : f32 to vector<1x256xf32>
    %48 = arith.mulf %34, %47 : vector<1x256xf32>
    %c11 = arith.constant 11 : index
    %49 = memref.load %arg2[%c11] : memref<40xf32, #tpu.memory_space<smem>>
    %50 = vector.broadcast %49 : f32 to vector<1x256xf32>
    %51 = arith.addf %48, %50 : vector<1x256xf32>
    %52 = arith.negf %51 : vector<1x256xf32>
    %53 = math.exp %52 : vector<1x256xf32>
    %cst_3 = arith.constant 1.000000e+00 : f32
    %54 = vector.broadcast %cst_3 : f32 to vector<1x256xf32>
    %55 = arith.addf %54, %53 : vector<1x256xf32>
    %56 = arith.divf %54, %55 : vector<1x256xf32>
    %c9 = arith.constant 9 : index
    %57 = memref.load %arg2[%c9] : memref<40xf32, #tpu.memory_space<smem>>
    %58 = vector.broadcast %57 : f32 to vector<1x256xf32>
    %59 = arith.mulf %34, %58 : vector<1x256xf32>
    %c12 = arith.constant 12 : index
    %60 = memref.load %arg2[%c12] : memref<40xf32, #tpu.memory_space<smem>>
    %61 = vector.broadcast %60 : f32 to vector<1x256xf32>
    %62 = arith.addf %59, %61 : vector<1x256xf32>
    %63 = arith.negf %62 : vector<1x256xf32>
    %64 = math.exp %63 : vector<1x256xf32>
    %cst_4 = arith.constant 1.000000e+00 : f32
    %65 = vector.broadcast %cst_4 : f32 to vector<1x256xf32>
    %66 = arith.addf %65, %64 : vector<1x256xf32>
    %67 = arith.divf %65, %66 : vector<1x256xf32>
    %c13 = arith.constant 13 : index
    %68 = memref.load %arg2[%c13] : memref<40xf32, #tpu.memory_space<smem>>
    %69 = vector.broadcast %68 : f32 to vector<1x256xf32>
    %70 = arith.mulf %45, %69 : vector<1x256xf32>
    %c14 = arith.constant 14 : index
    %71 = memref.load %arg2[%c14] : memref<40xf32, #tpu.memory_space<smem>>
    %72 = vector.broadcast %71 : f32 to vector<1x256xf32>
    %73 = arith.mulf %56, %72 : vector<1x256xf32>
    %74 = arith.addf %70, %73 : vector<1x256xf32>
    %c15 = arith.constant 15 : index
    %75 = memref.load %arg2[%c15] : memref<40xf32, #tpu.memory_space<smem>>
    %76 = vector.broadcast %75 : f32 to vector<1x256xf32>
    %77 = arith.mulf %67, %76 : vector<1x256xf32>
    %78 = arith.addf %74, %77 : vector<1x256xf32>
    %c31 = arith.constant 31 : index
    %79 = memref.load %arg2[%c31] : memref<40xf32, #tpu.memory_space<smem>>
    %80 = vector.broadcast %79 : f32 to vector<1x256xf32>
    %81 = arith.addf %78, %80 : vector<1x256xf32>
    %c16 = arith.constant 16 : index
    %82 = memref.load %arg2[%c16] : memref<40xf32, #tpu.memory_space<smem>>
    %83 = vector.broadcast %82 : f32 to vector<1x256xf32>
    %84 = arith.mulf %45, %83 : vector<1x256xf32>
    %c17 = arith.constant 17 : index
    %85 = memref.load %arg2[%c17] : memref<40xf32, #tpu.memory_space<smem>>
    %86 = vector.broadcast %85 : f32 to vector<1x256xf32>
    %87 = arith.mulf %56, %86 : vector<1x256xf32>
    %88 = arith.addf %84, %87 : vector<1x256xf32>
    %c18 = arith.constant 18 : index
    %89 = memref.load %arg2[%c18] : memref<40xf32, #tpu.memory_space<smem>>
    %90 = vector.broadcast %89 : f32 to vector<1x256xf32>
    %91 = arith.mulf %67, %90 : vector<1x256xf32>
    %92 = arith.addf %88, %91 : vector<1x256xf32>
    %c32 = arith.constant 32 : index
    %93 = memref.load %arg2[%c32] : memref<40xf32, #tpu.memory_space<smem>>
    %94 = vector.broadcast %93 : f32 to vector<1x256xf32>
    %95 = arith.addf %92, %94 : vector<1x256xf32>
    %c19 = arith.constant 19 : index
    %96 = memref.load %arg2[%c19] : memref<40xf32, #tpu.memory_space<smem>>
    %97 = vector.broadcast %96 : f32 to vector<1x256xf32>
    %98 = arith.mulf %45, %97 : vector<1x256xf32>
    %c20 = arith.constant 20 : index
    %99 = memref.load %arg2[%c20] : memref<40xf32, #tpu.memory_space<smem>>
    %100 = vector.broadcast %99 : f32 to vector<1x256xf32>
    %101 = arith.mulf %56, %100 : vector<1x256xf32>
    %102 = arith.addf %98, %101 : vector<1x256xf32>
    %c21 = arith.constant 21 : index
    %103 = memref.load %arg2[%c21] : memref<40xf32, #tpu.memory_space<smem>>
    %104 = vector.broadcast %103 : f32 to vector<1x256xf32>
    %105 = arith.mulf %67, %104 : vector<1x256xf32>
    %106 = arith.addf %102, %105 : vector<1x256xf32>
    %c33 = arith.constant 33 : index
    %107 = memref.load %arg2[%c33] : memref<40xf32, #tpu.memory_space<smem>>
    %108 = vector.broadcast %107 : f32 to vector<1x256xf32>
    %109 = arith.addf %106, %108 : vector<1x256xf32>
    %c22 = arith.constant 22 : index
    %110 = memref.load %arg2[%c22] : memref<40xf32, #tpu.memory_space<smem>>
    %111 = vector.broadcast %110 : f32 to vector<1x256xf32>
    %112 = arith.mulf %45, %111 : vector<1x256xf32>
    %c23 = arith.constant 23 : index
    %113 = memref.load %arg2[%c23] : memref<40xf32, #tpu.memory_space<smem>>
    %114 = vector.broadcast %113 : f32 to vector<1x256xf32>
    %115 = arith.mulf %56, %114 : vector<1x256xf32>
    %116 = arith.addf %112, %115 : vector<1x256xf32>
    %c24 = arith.constant 24 : index
    %117 = memref.load %arg2[%c24] : memref<40xf32, #tpu.memory_space<smem>>
    %118 = vector.broadcast %117 : f32 to vector<1x256xf32>
    %119 = arith.mulf %67, %118 : vector<1x256xf32>
    %120 = arith.addf %116, %119 : vector<1x256xf32>
    %c34 = arith.constant 34 : index
    %121 = memref.load %arg2[%c34] : memref<40xf32, #tpu.memory_space<smem>>
    %122 = vector.broadcast %121 : f32 to vector<1x256xf32>
    %123 = arith.addf %120, %122 : vector<1x256xf32>
    %c25 = arith.constant 25 : index
    %124 = memref.load %arg2[%c25] : memref<40xf32, #tpu.memory_space<smem>>
    %125 = vector.broadcast %124 : f32 to vector<1x256xf32>
    %126 = arith.mulf %45, %125 : vector<1x256xf32>
    %c26 = arith.constant 26 : index
    %127 = memref.load %arg2[%c26] : memref<40xf32, #tpu.memory_space<smem>>
    %128 = vector.broadcast %127 : f32 to vector<1x256xf32>
    %129 = arith.mulf %56, %128 : vector<1x256xf32>
    %130 = arith.addf %126, %129 : vector<1x256xf32>
    %c27 = arith.constant 27 : index
    %131 = memref.load %arg2[%c27] : memref<40xf32, #tpu.memory_space<smem>>
    %132 = vector.broadcast %131 : f32 to vector<1x256xf32>
    %133 = arith.mulf %67, %132 : vector<1x256xf32>
    %134 = arith.addf %130, %133 : vector<1x256xf32>
    %c35 = arith.constant 35 : index
    %135 = memref.load %arg2[%c35] : memref<40xf32, #tpu.memory_space<smem>>
    %136 = vector.broadcast %135 : f32 to vector<1x256xf32>
    %137 = arith.addf %134, %136 : vector<1x256xf32>
    %c28 = arith.constant 28 : index
    %138 = memref.load %arg2[%c28] : memref<40xf32, #tpu.memory_space<smem>>
    %139 = vector.broadcast %138 : f32 to vector<1x256xf32>
    %140 = arith.mulf %45, %139 : vector<1x256xf32>
    %c29 = arith.constant 29 : index
    %141 = memref.load %arg2[%c29] : memref<40xf32, #tpu.memory_space<smem>>
    %142 = vector.broadcast %141 : f32 to vector<1x256xf32>
    %143 = arith.mulf %56, %142 : vector<1x256xf32>
    %144 = arith.addf %140, %143 : vector<1x256xf32>
    %c30 = arith.constant 30 : index
    %145 = memref.load %arg2[%c30] : memref<40xf32, #tpu.memory_space<smem>>
    %146 = vector.broadcast %145 : f32 to vector<1x256xf32>
    %147 = arith.mulf %67, %146 : vector<1x256xf32>
    %148 = arith.addf %144, %147 : vector<1x256xf32>
    %c36 = arith.constant 36 : index
    %149 = memref.load %arg2[%c36] : memref<40xf32, #tpu.memory_space<smem>>
    %150 = vector.broadcast %149 : f32 to vector<1x256xf32>
    %151 = arith.addf %148, %150 : vector<1x256xf32>
    %152 = tpu.concatenate %81, %95, %109, %123, %137, %151 in 0 : vector<1x256xf32>, vector<1x256xf32>, vector<1x256xf32>, vector<1x256xf32>, vector<1x256xf32>, vector<1x256xf32> -> vector<6x256xf32>
    %c0_5 = arith.constant 0 : index
    %c0_6 = arith.constant 0 : index
    %153 = vector.load %arg3[%c0_5, %c0_6] : memref<6x256xf32, #tpu.memory_space<vmem>>, vector<6x256xf32>
    tpu.vector_store %arg3[%c0_5, %c0_6], %152 {strides = array<i32>} : memref<6x256xf32, #tpu.memory_space<vmem>>, vector<6x256xf32>,
    return
  }
  func.func @transform_0(%arg0: i32) -> (i32, i32) {
    %c0_i32 = arith.constant 0 : i32
    %c0_i32_0 = arith.constant 0 : i32
    return %c0_i32, %arg0 : i32, i32
  }
  func.func @transform_1(%arg0: i32) -> i32 {
    %c0_i32 = arith.constant 0 : i32
    %c0_i32_0 = arith.constant 0 : i32
    return %c0_i32 : i32
  }
  func.func @transform_2(%arg0: i32) -> (i32, i32) {
    %c0_i32 = arith.constant 0 : i32
    %c0_i32_0 = arith.constant 0 : i32
    return %c0_i32, %arg0 : i32, i32
  }
}

</mosaic_0001>

<bundles_post_ra>
// kernel: tpu_custom_call.1
= control target key start
LH: loop header
LB: loop body
LE: loop exit
PB: predicated region body
PF: predicated region fallthrough
CT: control target
= control target key end

     0   :  { %7 = vsyncpa [#allocation3], 0  ;;  %s664_s0 = inlined_call_operand.hbm [shape: f32[6,256], index: 0, kind: input, shape index: {}]   ;;  %s665_s1 = inlined_call_operand.vmem [shape: f32[40], index: 1, kind: input, shape index: {}]   ;;  %s666_s2 = inlined_call_operand.hbm [shape: f32[6,256], index: 2, kind: output, shape index: {}]  }
   0x1   :  { %8 = vsyncpa [#allocation5], 0 }
   0x2   :  { %9 = vsyncpa [#allocation4], 0  ;;  %s26_s11 = sshll.u32 %s665_s1, 4  ;;  %s483_s12 = smov [#allocation2]   ;;  %s27_s11 = int_to_ptr.vmem [resolvable:$true] %s26_s11 }
   0x3   :  { %s16_s13 = sshll.u32 %s483_s12, 4  ;;  %s421_s16 = scalar_lea.hbm %s664_s0, 256  ;;  %s17_s13 = int_to_ptr.vmem [resolvable:$true] %s16_s13 }
   0x4   :  { %p422_p0 = scmp.ne.s32.totalorder %s664_s0, %s421_s16  ;;  %p425_p1 = scmp.lt.u32.totalorder %s421_s16, %s664_s0 }
   0x6   :  { %p427_p2 = pnand %p425_p1, %p422_p0 }
   0x8   :  { %430 = shalt.err (!%p427_p2)
}
   0x9   :  { %s431_s21 = scalar_lea.vmem %s17_s13, 256  ;;  %p436_p4 = scmp.lt.s32.totalorder %s17_s13, %s17_s13 }
   0xa   :  { %p432_p3 = scmp.ne.s32.totalorder %s17_s13, %s431_s21  ;;  %p437_p5 = scmp.lt.s32.totalorder %s431_s21, %s431_s21 }
   0xc   :  { %p438_p6 = por %p437_p5, %p436_p4 }
   0xe   :  { %p439_p7 = pnand %p438_p6, %p432_p3 }
  0x10   :  { %442 = shalt.err (!%p439_p7)
}
  0x11   :  { %19 = dma.hbm_to_vmem [thread:$0]  %s664_s0, 256, %s17_s13, [#allocation3]  }
  0x12   :  { %s443_s23 = scalar_lea.vmem %s27_s11, 16  ;;  %p448_p9 = scmp.lt.s32.totalorder %s27_s11, %s27_s11 }
  0x13   :  { %p444_p8 = scmp.ne.s32.totalorder %s27_s11, %s443_s23  ;;  %p449_p10 = scmp.lt.s32.totalorder %s443_s23, %s443_s23 }
  0x15   :  { %p450_p11 = por %p449_p10, %p448_p9 }
  0x17   :  { %p451_p12 = pnand %p450_p11, %p444_p8 }
  0x19   :  { %454 = shalt.err (!%p451_p12)
}
  0x1a   :  { %s484_s24 = smov [#allocation6]  }
  0x1b   :  { %29 = dma.vmem_to_smem %s27_s11, 16, %s484_s24, [#allocation5]  }
  0x1c   :  { %477 = dma.done.wait [#allocation3], 256  }
  0x1d   :  { %478 = vsyncadd [#allocation3], 4294967040 }
  0x1e   :  { %479 = dma.done.wait [#allocation5], 16  }
  0x1f   :  { %480 = vsyncadd [#allocation5], 4294967280 }
  0x20   :  { %36 = sfence }
  0x21   :  { %s39_s25 = sld [smem:[#allocation6]]  ;;  %s352_s26 = sld [smem:[#allocation6 + $0x1]]  ;;  %v37_v0 = vld [vmem:[#allocation2] sm:$0x3f]  ;;  %v38_v1 = vld [vmem:[#allocation2 + $0x8] sm:$0x3f] }
  0x22   :  { %s353_s27 = sld [smem:[#allocation6 + $0x2]]  ;;  %s354_s28 = sld [smem:[#allocation6 + $0x3]]  ;;  %vm319_vm0 = vcmask 1040384   ;;  %vm322_vm1 = vcmask 1041408   ;;  %vm325_vm2 = vcmask 1042432   ;;  %vm328_vm3 = vcmask 1043456  }
  0x23   :  { %s355_s29 = sld [smem:[#allocation6 + $0x4]]  ;;  %s356_s0 = sld [smem:[#allocation6 + $0x5]]  ;;  %vm331_vm4 = vcmask 1044480  }
  0x24   :  { %s357_s30 = sld [smem:[#allocation6 + $0x6]]  ;;  %s358_s3 = sld [smem:[#allocation6 + $0x7]] }
  0x25   :  { %s362_s4 = sld [smem:[#allocation6 + $0x8]]  ;;  %s359_s5 = sld [smem:[#allocation6 + $0xa]] }
  0x26   :  { %s366_s6 = sld [smem:[#allocation6 + $0x9]]  ;;  %s363_s7 = sld [smem:[#allocation6 + $0xb]] }
  0x27   :  { %v40_v2 = vstv %s39_s25  ;;  %v44_v5 = vstv %s352_s26  ;;  %s367_s8 = sld [smem:[#allocation6 + $0xc]]  ;;  %s516_s9 = sld [smem:[#allocation6 + $0xd]] }
  0x28   :  { %v41_v3 = vmul.f32 %v40_v2, %v37_v0  ;;  %v42_v4 = vmul.f32 %v40_v2, %v38_v1  ;;  %v56_v6 = vstv %s353_s27  ;;  %v45_v7 = vmul.f32 %v44_v5, %v37_v0  ;;  %s518_s10 = sld [smem:[#allocation6 + $0xe]]  ;;  %s520_s11 = sld [smem:[#allocation6 + $0xf]] }
  0x29   :  { %v46_v8 = vmul.f32 %v44_v5, %v38_v1  ;;  %v57_v9 = vmul.f32 %v56_v6, %v37_v0  ;;  %v58_v10 = vmul.f32 %v56_v6, %v38_v1  ;;  %v68_v11 = vstv %s354_s28  ;;  %s522_s12 = sld [smem:[#allocation6 + $0x1f]]  ;;  %s524_s13 = sld [smem:[#allocation6 + $0x10]] }
  0x2a   :  { %v80_v12 = vstv %s355_s29  ;;  %v92_v13 = vstv %s356_s0  ;;  %v49_v14 = vrot.slane %v45_v7, 1  ;;  %v69_v18 = vmul.f32 %v68_v11, %v37_v0  ;;  %s526_s14 = sld [smem:[#allocation6 + $0x11]]  ;;  %s528_s15 = sld [smem:[#allocation6 + $0x12]] }
  0x2b   :  { %v50_v15 = vrot.slane %v46_v8, 1  ;;  %v61_v16 = vrot.slane %v57_v9, 2  ;;  %v62_v17 = vrot.slane %v58_v10, 2  ;;  %v70_v19 = vmul.f32 %v68_v11, %v38_v1  ;;  %s530_s16 = sld [smem:[#allocation6 + $0x20]]  ;;  %s532_s17 = sld [smem:[#allocation6 + $0x13]] }
  0x2c   :  { %v81_v20 = vmul.f32 %v80_v12, %v37_v0  ;;  %v82_v21 = vmul.f32 %v80_v12, %v38_v1  ;;  %v53_v22 = vadd.f32 %v49_v14, %v41_v3  ;;  %v93_v24 = vmul.f32 %v92_v13, %v37_v0  ;;  %s534_s18 = sld [smem:[#allocation6 + $0x14]]  ;;  %s536_s19 = sld [smem:[#allocation6 + $0x15]] }
  0x2d   :  { %v54_v23 = vadd.f32 %v50_v15, %v42_v4  ;;  %v94_v25 = vmul.f32 %v92_v13, %v38_v1  ;;  %v73_v26 = vrot.slane %v69_v18, 3  ;;  %v74_v27 = vrot.slane %v70_v19, 3  ;;  %s538_s20 = sld [smem:[#allocation6 + $0x21]]  ;;  %s540_s21 = sld [smem:[#allocation6 + $0x16]] }
  0x2e   :  { %v65_v28 = vadd.f32 %v61_v16, %v53_v22  ;;  %v85_v30 = vrot.slane %v81_v20, 4  ;;  %v86_v31 = vrot.slane %v82_v21, 4  ;;  %v97_v34 = vrot.slane %v93_v24, 5  ;;  %s542_s1 = sld [smem:[#allocation6 + $0x17]]  ;;  %s544_s22 = sld [smem:[#allocation6 + $0x18]] }
  0x2f   :  { %v66_v29 = vadd.f32 %v62_v17, %v54_v23  ;;  %v98_v35 = vrot.slane %v94_v25, 5  ;;  %v104_v38 = vstv %s357_s30  ;;  %v110_v43 = vstv %s358_s3  ;;  %s546_s23 = sld [smem:[#allocation6 + $0x22]]  ;;  %s548_s24 = sld [smem:[#allocation6 + $0x19]] }
  0x30   :  { %v77_v32 = vadd.f32 %v73_v26, %v65_v28  ;;  %v130_v44 = vstv %s362_s4  ;;  %v150_v47 = vstv %s366_s6  ;;  %v114_v48 = vstv %s359_s5  ;;  %s550_s25 = sld [smem:[#allocation6 + $0x1a]]  ;;  %s552_s26 = sld [smem:[#allocation6 + $0x1b]] }
  0x31   :  { %v78_v33 = vadd.f32 %v74_v27, %v66_v29  ;;  %v134_v49 = vstv %s363_s7  ;;  %v154_v50 = vstv %s367_s8  ;;  %s554_s27 = sld [smem:[#allocation6 + $0x23]]  ;;  %s556_s28 = sld [smem:[#allocation6 + $0x1c]]  ;;  %v170_v17 = vstv %s516_s9 }
  0x32   :  { %v89_v36 = vadd.f32 %v85_v30, %v77_v32  ;;  %s558_s29 = sld [smem:[#allocation6 + $0x1d]]  ;;  %s560_s0 = sld [smem:[#allocation6 + $0x1e]]  ;;  %v174_v18 = vstv %s518_s10  ;;  %v180_v19 = vstv %s520_s11  ;;  %v186_v20 = vstv %s522_s12 }
  0x33   :  { %v90_v37 = vadd.f32 %v86_v31, %v78_v33  ;;  %s562_s30 = sld [smem:[#allocation6 + $0x24]]  ;;  %v190_v21 = vstv %s524_s13  ;;  %v194_v22 = vstv %s526_s14  ;;  %v200_v23 = vstv %s528_s15  ;;  %s485_s3 = smov [#allocation7]  }
  0x34   :  { %v101_v39 = vadd.f32 %v97_v34, %v89_v36  ;;  %v206_v24 = vstv %s530_s16  ;;  %v210_v25 = vstv %s532_s17  ;;  %v214_v26 = vstv %s534_s18  ;;  %s342_s4 = sshll.u32 %s485_s3, 4  ;;  %s343_s4 = int_to_ptr.vmem [resolvable:$true] %s342_s4 }
  0x35   :  { %v102_v40 = vadd.f32 %v98_v35, %v90_v37  ;;  %v220_v27 = vstv %s536_s19  ;;  %v226_v28 = vstv %s538_s20  ;;  %v230_v29 = vstv %s540_s21  ;;  %s455_s5 = scalar_lea.vmem %s343_s4, 256  ;;  %p460_p0 = scmp.lt.s32.totalorder %s343_s4, %s343_s4 }
  0x36   :  { %v105_v41 = vadd.f32 %v104_v38, %v101_v39  ;;  %v234_v30 = vstv %s542_s1  ;;  %v240_v31 = vstv %s544_s22  ;;  %v246_v32 = vstv %s546_s23  ;;  %p456_p13 = scmp.ne.s32.totalorder %s343_s4, %s455_s5  ;;  %p461_p1 = scmp.lt.s32.totalorder %s455_s5, %s455_s5 }
  0x37   :  { %v106_v42 = vadd.f32 %v104_v38, %v102_v40  ;;  %v250_v33 = vstv %s548_s24  ;;  %v254_v34 = vstv %s550_s25  ;;  %v260_v35 = vstv %s552_s26 }
  0x38   :  { %v107_v45 = vmax.f32 %v105_v41, 0.0  ;;  %v266_v36 = vstv %s554_s27  ;;  %v270_v38 = vstv %s556_s28  ;;  %v274_v39 = vstv %s558_s29  ;;  %p462_p2 = por %p461_p1, %p460_p0 }
  0x39   :  { %v108_v46 = vmax.f32 %v106_v42, 0.0  ;;  %v280_v40 = vstv %s560_s0  ;;  %v286_v41 = vstv %s562_s30 }
  0x3a   :  { %v111_v51 = vmul.f32 %v110_v43, %v107_v45  ;;  %v131_v53 = vmul.f32 %v130_v44, %v107_v45  ;;  %v151_v55 = vmul.f32 %v150_v47, %v107_v45  ;;  %p463_p3 = pnand %p462_p2, %p456_p13 }
  0x3b   :  { %v112_v52 = vmul.f32 %v110_v43, %v108_v46  ;;  %v132_v54 = vmul.f32 %v130_v44, %v108_v46  ;;  %v152_v56 = vmul.f32 %v150_v47, %v108_v46 }
  0x3c   :  { %v115_v57 = vadd.f32 %v114_v48, %v111_v51  ;;  %v135_v59 = vadd.f32 %v134_v49, %v131_v53  ;;  %v155_v61 = vadd.f32 %v154_v50, %v151_v55 }
  0x3d   :  { %v116_v58 = vadd.f32 %v114_v48, %v112_v52  ;;  %v136_v60 = vadd.f32 %v134_v49, %v132_v54  ;;  %v156_v62 = vadd.f32 %v154_v50, %v152_v56 }
  0x3e   :  { %v360_v63 = vmul.f32 -1.442695, %v115_v57  ;;  %v364_v1 = vmul.f32 -1.442695, %v135_v59  ;;  %v368_v3 = vmul.f32 -1.442695, %v155_v61 }
  0x3f   :  { %v361_v0 = vmul.f32 -1.442695, %v116_v58  ;;  %v365_v2 = vmul.f32 -1.442695, %v136_v60  ;;  %v369_v4 = vmul.f32 -1.442695, %v156_v62 }
  0x40   :  { %397 = vpow2.f32 %v360_v63 }
  0x41   :  { %399 = vpow2.f32 %v361_v0 }
  0x42   :  { %401 = vpow2.f32 %v364_v1 }
  0x43   :  { %403 = vpow2.f32 %v365_v2 }
  0x44   :  { %405 = vpow2.f32 %v368_v3 }
  0x45   :  { %407 = vpow2.f32 %v369_v4 }
  0x4a   :  { %v398_v5 = vpop.eup %397 }
  0x4b   :  { %v400_v6 = vpop.eup %399  ;;  %v123_v7 = vadd.f32 1.0, %v398_v5 }
  0x4c   :  { %v402_v8 = vpop.eup %401  ;;  %v124_v9 = vadd.f32 1.0, %v400_v6 }
  0x4d   :  { %v404_v10 = vpop.eup %403  ;;  %409 = vrcp.f32 %v123_v7  ;;  %v143_v11 = vadd.f32 1.0, %v402_v8 }
  0x4e   :  { %v406_v12 = vpop.eup %405  ;;  %411 = vrcp.f32 %v124_v9  ;;  %v144_v13 = vadd.f32 1.0, %v404_v10 }
  0x4f   :  { %v408_v14 = vpop.eup %407  ;;  %413 = vrcp.f32 %v143_v11  ;;  %v163_v15 = vadd.f32 1.0, %v406_v12 }
  0x50   :  { %415 = vrcp.f32 %v144_v13  ;;  %v164_v16 = vadd.f32 1.0, %v408_v14 }
  0x51   :  { %417 = vrcp.f32 %v163_v15 }
  0x52   :  { %419 = vrcp.f32 %v164_v16 }
  0x57   :  { %v584_v37 = vpop.eup %409 }
  0x58   :  { %v590_v42 = vpop.eup %411  ;;  %v171_v43 = vmul.f32 %v584_v37, %v170_v17  ;;  %v191_v44 = vmul.f32 %v584_v37, %v190_v21  ;;  %v211_v45 = vmul.f32 %v584_v37, %v210_v25  ;;  %v231_v46 = vmul.f32 %v584_v37, %v230_v29 }
  0x59   :  { %v414_v47 = vpop.eup %413  ;;  %v172_v48 = vmul.f32 %v590_v42, %v170_v17  ;;  %v192_v49 = vmul.f32 %v590_v42, %v190_v21  ;;  %v212_v50 = vmul.f32 %v590_v42, %v210_v25  ;;  %v232_v51 = vmul.f32 %v590_v42, %v230_v29 }
  0x5a   :  { %v416_v52 = vpop.eup %415  ;;  %v175_v53 = vmul.f32 %v414_v47, %v174_v18  ;;  %v195_v54 = vmul.f32 %v414_v47, %v194_v22  ;;  %v215_v55 = vmul.f32 %v414_v47, %v214_v26  ;;  %v235_v56 = vmul.f32 %v414_v47, %v234_v30 }
  0x5b   :  { %v418_v57 = vpop.eup %417  ;;  %v176_v58 = vmul.f32 %v416_v52, %v174_v18  ;;  %v196_v59 = vmul.f32 %v416_v52, %v194_v22  ;;  %v216_v60 = vmul.f32 %v416_v52, %v214_v26  ;;  %v236_v61 = vmul.f32 %v416_v52, %v234_v30 }
  0x5c   :  { %v420_v62 = vpop.eup %419  ;;  %v177_v63 = vadd.f32 %v175_v53, %v171_v43  ;;  %v181_v0 = vmul.f32 %v418_v57, %v180_v19  ;;  %v197_v1 = vadd.f32 %v195_v54, %v191_v44  ;;  %v201_v2 = vmul.f32 %v418_v57, %v200_v23 }
  0x5d   :  { %v178_v3 = vadd.f32 %v176_v58, %v172_v48  ;;  %v182_v4 = vmul.f32 %v420_v62, %v180_v19  ;;  %v198_v5 = vadd.f32 %v196_v59, %v192_v49  ;;  %v202_v6 = vmul.f32 %v420_v62, %v200_v23 }
  0x5e   :  { %v183_v7 = vadd.f32 %v181_v0, %v177_v63  ;;  %v203_v8 = vadd.f32 %v201_v2, %v197_v1  ;;  %v217_v9 = vadd.f32 %v215_v55, %v211_v45  ;;  %v218_v10 = vadd.f32 %v216_v60, %v212_v50 }
  0x5f   :  { %v184_v11 = vadd.f32 %v182_v4, %v178_v3  ;;  %v204_v12 = vadd.f32 %v202_v6, %v198_v5  ;;  %v221_v13 = vmul.f32 %v418_v57, %v220_v27  ;;  %v222_v14 = vmul.f32 %v420_v62, %v220_v27 }
  0x60   :  { %v187_v15 = vadd.f32 %v186_v20, %v183_v7  ;;  %v207_v16 = vadd.f32 %v206_v24, %v203_v8  ;;  %v237_v17 = vadd.f32 %v235_v56, %v231_v46  ;;  %v238_v18 = vadd.f32 %v236_v61, %v232_v51 }
  0x61   :  { %v188_v19 = vadd.f32 %v186_v20, %v184_v11  ;;  %v208_v21 = vadd.f32 %v206_v24, %v204_v12  ;;  %v223_v22 = vadd.f32 %v221_v13, %v217_v9  ;;  %v224_v23 = vadd.f32 %v222_v14, %v218_v10 }
  0x62   :  { %v241_v25 = vmul.f32 %v418_v57, %v240_v31  ;;  %v242_v26 = vmul.f32 %v420_v62, %v240_v31  ;;  %v251_v27 = vmul.f32 %v584_v37, %v250_v33  ;;  %v252_v29 = vmul.f32 %v590_v42, %v250_v33 }
  0x63   :  { %v227_v20 = vadd.f32 %v226_v28, %v223_v22  ;;  %v228_v24 = vadd.f32 %v226_v28, %v224_v23  ;;  %v255_v30 = vmul.f32 %v414_v47, %v254_v34  ;;  %v256_v43 = vmul.f32 %v416_v52, %v254_v34 }
  0x64   :  { %v243_v31 = vadd.f32 %v241_v25, %v237_v17  ;;  %v244_v44 = vadd.f32 %v242_v26, %v238_v18  ;;  %v261_v45 = vmul.f32 %v418_v57, %v260_v35  ;;  %v262_v33 = vmul.f32 %v420_v62, %v260_v35 }
  0x65   :  { %v257_v46 = vadd.f32 %v255_v30, %v251_v27  ;;  %v258_v48 = vadd.f32 %v256_v43, %v252_v29  ;;  %v271_v28 = vmul.f32 %v584_v37, %v270_v38  ;;  %v272_v49 = vmul.f32 %v590_v42, %v270_v38 }
  0x66   :  { %v247_v34 = vadd.f32 %v246_v32, %v243_v31  ;;  %v248_v50 = vadd.f32 %v246_v32, %v244_v44  ;;  %v275_v51 = vmul.f32 %v414_v47, %v274_v39  ;;  %v276_v53 = vmul.f32 %v416_v52, %v274_v39 }
  0x67   :  { %v263_v54 = vadd.f32 %v261_v45, %v257_v46  ;;  %v264_v35 = vadd.f32 %v262_v33, %v258_v48  ;;  %v281_v55 = vmul.f32 %v418_v57, %v280_v40  ;;  %v282_v56 = vmul.f32 %v420_v62, %v280_v40 }
  0x68   :  { %v277_v58 = vadd.f32 %v275_v51, %v271_v28  ;;  %v278_v37 = vadd.f32 %v276_v53, %v272_v49  ;;  %v291_v59 = vrot.slane %v207_v16, 7  ;;  %v292_v38 = vrot.slane %v208_v21, 7 }
  0x69   :  { %v267_v42 = vadd.f32 %v266_v36, %v263_v54  ;;  %v268_v32 = vadd.f32 %v266_v36, %v264_v35  ;;  %v297_v60 = vrot.slane %v227_v20, 6  ;;  %v298_v47 = vrot.slane %v228_v24, 6 }
  0x6a   :  { %v283_v61 = vadd.f32 %v281_v55, %v277_v58  ;;  %v284_v39 = vadd.f32 %v282_v56, %v278_v37  ;;  %v303_v52 = vrot.slane %v247_v34, 5  ;;  %v304_v63 = vrot.slane %v248_v50, 5 }
  0x6b   :  { %v309_v0 = vrot.slane %v267_v42, 4  ;;  %v310_v57 = vrot.slane %v268_v32, 4  ;;  %v320_v40 = vsel %vm319_vm0, %v187_v15, %v291_v59  ;;  %v321_v62 = vsel %vm319_vm0, %v188_v19, %v292_v38 }
  0x6c   :  { %v287_v1 = vadd.f32 %v286_v41, %v283_v61  ;;  %v288_v2 = vadd.f32 %v286_v41, %v284_v39  ;;  %v323_v3 = vsel %vm322_vm1, %v320_v40, %v297_v60  ;;  %v324_v36 = vsel %vm322_vm1, %v321_v62, %v298_v47 }
  0x6d   :  { %v326_v4 = vsel %vm325_vm2, %v323_v3, %v303_v52  ;;  %v327_v5 = vsel %vm325_vm2, %v324_v36, %v304_v63 }
  0x6e   :  { %v315_v6 = vrot.slane %v287_v1, 3  ;;  %v316_v7 = vrot.slane %v288_v2, 3  ;;  %v329_v8 = vsel %vm328_vm3, %v326_v4, %v309_v0  ;;  %v330_v9 = vsel %vm328_vm3, %v327_v5, %v310_v57 }
  0x70   :  { %v332_v10 = vsel %vm331_vm4, %v329_v8, %v315_v6  ;;  %v333_v41 = vsel %vm331_vm4, %v330_v9, %v316_v7 }
  0x71   :  { %334 = vst [vmem:[#allocation7] sm:$0x3f] %v332_v10  ;;  %335 = vst [vmem:[#allocation7 + $0x8] sm:$0x3f] %v333_v41 }
  0x72   :  { %466 = shalt.err (!%p463_p3)
}
  0x73   :  { %s467_s8 = scalar_lea.hbm %s666_s2, 256 }
  0x74   :  { %p468_p4 = scmp.ne.s32.totalorder %s666_s2, %s467_s8  ;;  %p471_p5 = scmp.lt.u32.totalorder %s467_s8, %s666_s2 }
  0x76   :  { %p473_p6 = pnand %p471_p5, %p468_p4 }
  0x78   :  { %476 = shalt.err (!%p473_p6)
}
  0x79   :  { %345 = dma.vmem_to_hbm [thread:$0]  %s343_s4, 256, %s666_s2, [#allocation4]  }
  0x7a   :  { %481 = dma.done.wait [#allocation4], 256  }
  0x7b   :  { %482 = vsyncadd [#allocation4], 4294967040 }
  0x7c   :  { %349 = vsyncpa [#allocation3], 1 }
  0x7d   :  { %350 = vsyncpa [#allocation4], 1 }
  0x7e   :  { %351 = vsyncpa [#allocation5], 1 }

</bundles_post_ra>
